<compile_context>
chip_gen: v6e
topology: v6e:2x2x1
jax: 0.10.0
libtpu: 0.0.40
codegen_flags: <defaults>
</compile_context>

<pallas_src>
import math

import jax
import jax.numpy as jnp
from jax.experimental import pallas as pl
from jax.experimental.pallas import tpu as pltpu

EPS = 1e-5


# --------------------------------------------------------------------------
# Kernels
# --------------------------------------------------------------------------
def _make_kernels(true_ndim):
    """Build kernels closed over the true (un-padded) feature width."""
    inv_n = 1.0 / float(true_ndim)  # weak-typed python float -> stays f32

    def _normalize(x_ref):
        # Single-pass mean/var in f32. Padded lanes are zeros, so they do not
        # perturb s1/s2; the divisor is the true ndim.
        x = x_ref[...].astype(jnp.float32)
        s1 = jnp.sum(x, axis=-1, keepdims=True)
        s2 = jnp.sum(x * x, axis=-1, keepdims=True)
        mean = s1 * inv_n
        var = s2 * inv_n - mean * mean
        var = jnp.maximum(var, 0.0)  # guard cancellation before rsqrt
        inv = jax.lax.rsqrt(var + EPS)
        # NOTE: if bundle dumps ever show VALU saturation (bf16 on v7x), the
        # row sums can be offloaded to the MXU via jnp.dot against a ones
        # column with preferred_element_type=f32; HBM-bound otherwise.
        return (x - mean) * inv

    def kernel_bias(x_ref, w_ref, b_ref, o_ref):
        # x_ref: (tile_rows, ndim_p); w_ref, b_ref: (1, ndim_p) f32
        y = _normalize(x_ref)
        o_ref[...] = (y * w_ref[...] + b_ref[...]).astype(o_ref.dtype)

    def kernel_nobias(x_ref, w_ref, o_ref):
        y = _normalize(x_ref)
        o_ref[...] = (y * w_ref[...]).astype(o_ref.dtype)

    return kernel_bias, kernel_nobias


# --------------------------------------------------------------------------
# Hardware / tiling heuristics
# --------------------------------------------------------------------------
def _tpu_vmem_and_gen():
    """Return (vmem_capacity_bytes, is_v7x_class). Robust to missing info."""
    kind = ""
    try:
        kind = jax.devices()[0].device_kind.lower()
    except Exception:
        pass

    vmem_cap = None
    info_ok = False
    try:
        vmem_cap = int(pltpu.get_tpu_info().vmem_capacity_bytes)
        info_ok = vmem_cap > 0
    except Exception:
        vmem_cap = None

    if not info_ok or vmem_cap is None:
        # Fall back on device-kind sniffing; unknown -> conservative 64 MiB.
        vmem_cap = (128 << 20) if ("v5" in kind or "v6" in kind) else (64 << 20)

    # v7x-class: 64 MiB VMEM per TC and 2 TCs per chip.
    is_v7 = ("v7" in kind) or (info_ok and vmem_cap <= (80 << 20))
    return vmem_cap, is_v7


def _min_tile_rows(dtype):
    nbytes = jnp.dtype(dtype).itemsize
    if nbytes >= 4:
        return 8    # f32
    if nbytes == 2:
        return 16   # bf16 sublane packing
    return 32       # int8 / fp8


def _pick_tile_rows(rows, ndim_p, dtype, vmem_budget, is_v7):
    """Largest row tile fitting VMEM; prefer divisors only if >= cap/2."""
    min_rows = _min_tile_rows(dtype)
    in_bytes = jnp.dtype(dtype).itemsize

    # Per-row VMEM footprint: double-buffered input + double-buffered output
    # (2 buffers each) plus ~3 f32-wide temporaries for the in-kernel math.
    per_row = ndim_p * (4 * in_bytes + 3 * 4)
    cap = max(min_rows, vmem_budget // max(per_row, 1))

    # Hard cap: amortize ~0.35us/step overhead without over-pressuring VMEM.
    if is_v7:
        hard_cap = 1024
    else:
        hard_cap = 4096 if ndim_p <= 2048 else 2048
    cap = min(hard_cap, cap)
    cap = max(min_rows, (cap // min_rows) * min_rows)

    # Guarantee multiple grid steps: pipelining everywhere, and on v7x-class
    # chips (2 TCs) at least ~2 steps per core so neither core is starved.
    min_steps = 4 if is_v7 else 2
    if rows > min_rows:
        per_step = -(-rows // min_steps)                       # cdiv
        per_step = max(min_rows,
                       ((per_step + min_rows - 1) // min_rows) * min_rows)
        cap = max(min_rows, min(cap, per_step))

    if rows <= cap:
        return rows  # single block; block == full array dim is always legal

    # Prefer an exact divisor, but only if it stays >= ~cap/2 (otherwise the
    # search can degenerate to tiny tiles on e.g. rows = 8 * prime).
    lo = max(min_rows, cap // 2)
    t = cap
    while t >= lo:
        if rows % t == 0:
            return t
        t -= min_rows
    # Fall back: grid = cdiv(rows, cap); Pallas masks the partial last block.
    return cap


# --------------------------------------------------------------------------
# Public wrapper
# --------------------------------------------------------------------------
def layer_norm(x, weight, bias=None, *, tile_rows=None):
    """LayerNorm over the last dim of x. bias may be None (bias=False)."""
    ndim = x.shape[-1]
    assert weight.shape == (ndim,)
    if bias is not None:
        assert bias.shape == (ndim,)

    orig_shape = x.shape
    rows = math.prod(orig_shape[:-1]) if len(orig_shape) > 1 else 1
    x2 = x.reshape(rows, ndim)

    # Lane-dense last dim: pad to a multiple of 128 (zeros -> sums unchanged,
    # divisor uses true ndim). No-op for real hidden sizes (multiples of 128).
    ndim_p = ((ndim + 127) // 128) * 128
    pad = ndim_p - ndim
    w = weight.astype(jnp.float32)
    b = bias.astype(jnp.float32) if bias is not None else None
    if pad:
        x2 = jnp.pad(x2, ((0, 0), (0, pad)))
        w = jnp.pad(w, (0, pad))
        if b is not None:
            b = jnp.pad(b, (0, pad))
    w = w.reshape(1, ndim_p)
    if b is not None:
        b = b.reshape(1, ndim_p)

    vmem_cap, is_v7 = _tpu_vmem_and_gen()
    margin = max(10 << 20, vmem_cap // 8)           # ~10-16 MiB headroom
    vmem_limit = max(16 << 20, vmem_cap - margin)
    budget = max(8 << 20, vmem_limit - (4 << 20))   # extra slack for temps

    if tile_rows is None:
        tile_rows = _pick_tile_rows(rows, ndim_p, x.dtype, budget, is_v7)
    tile_rows = max(1, min(int(tile_rows), rows))

    grid = (pl.cdiv(rows, tile_rows),)
    x_spec = pl.BlockSpec((tile_rows, ndim_p), lambda i: (i, 0))
    o_spec = pl.BlockSpec((tile_rows, ndim_p), lambda i: (i, 0))
    p_spec = pl.BlockSpec((1, ndim_p), lambda i: (0, 0))

    compiler_params = pltpu.CompilerParams(
        dimension_semantics=("parallel",),  # row axis: shard across TCs
        vmem_limit_bytes=int(vmem_limit),
    )

    kernel_bias, kernel_nobias = _make_kernels(ndim)
    if bias is None:
        kernel = kernel_nobias
        params = (w,)
        in_specs = [x_spec, p_spec]
    else:
        kernel = kernel_bias
        params = (w, b)
        in_specs = [x_spec, p_spec, p_spec]

    out = pl.pallas_call(
        kernel,
        out_shape=jax.ShapeDtypeStruct((rows, ndim_p), x.dtype),
        grid_spec=pltpu.PrefetchScalarGridSpec(
            num_scalar_prefetch=0,
            grid=grid,
            in_specs=in_specs,
            out_specs=o_spec,
        ),
        compiler_params=compiler_params,
    )(x2, *params)

    if pad:
        out = out[:, :ndim]
    return out.reshape(orig_shape)


# --------------------------------------------------------------------------
# Self-test
# --------------------------------------------------------------------------
if __name__ == "__main__":
    key = jax.random.PRNGKey(0)
    kx, kw, kb = jax.random.split(key, 3)

    batch, seq, hidden = 2, 8, 32
    x = jax.random.normal(kx, (batch, seq, hidden), dtype=jnp.float32)

    # Learnable params (module init is ones/zeros; perturb deterministically
    # so the affine path is actually exercised by the check).
    weight = jnp.ones((hidden,), jnp.float32) + 0.1 * jax.random.normal(
        kw, (hidden,), dtype=jnp.float32)
    bias = 0.1 * jax.random.normal(kb, (hidden,), dtype=jnp.float32)

    y = layer_norm(x, weight, bias)
    jax.block_until_ready(y)

    y_nb = layer_norm(x, weight, None)   # bias=False variant
    jax.block_until_ready(y_nb)

    # Reference: plain-JAX layer norm (matches F.layer_norm semantics).
    mean = jnp.mean(x, axis=-1, keepdims=True)
    var = jnp.mean((x - mean) ** 2, axis=-1, keepdims=True)
    norm = (x - mean) / jnp.sqrt(var + EPS)
    ref = norm * weight + bias
    ref_nb = norm * weight

    assert y.shape == x.shape and y_nb.shape == x.shape
    assert jnp.allclose(y, ref, atol=1e-4, rtol=1e-4), "mismatch (bias)"
    assert jnp.allclose(y_nb, ref_nb, atol=1e-4, rtol=1e-4), "mismatch (no bias)"

    print("KERNEL_OK")
</pallas_src>

<mosaic_0001>
module attributes {stable_mosaic.version = 11 : i64} {
  func.func @kernel_bias(%arg0: i32, %arg1: memref<8x128xf32, #tpu.memory_space<vmem>>, %arg2: memref<1x128xf32, #tpu.memory_space<vmem>>, %arg3: memref<1x128xf32, #tpu.memory_space<vmem>>, %arg4: memref<8x128xf32, #tpu.memory_space<vmem>>) attributes {dimension_semantics = [#tpu.dimension_semantics<parallel>], iteration_bounds = array<i64: 2>, scalar_prefetch = 0 : i64, scratch_operands = 0 : i64, tpu.core_type = #tpu.core_type<tc>, window_params = [{transform_indices = @transform_0, window_bounds = array<i64: 8, 128>}, {pipeline_mode = #tpu.pipeline_mode<synchronous>, transform_indices = @transform_1, window_bounds = array<i64: 1, 128>}, {pipeline_mode = #tpu.pipeline_mode<synchronous>, transform_indices = @transform_2, window_bounds = array<i64: 1, 128>}, {transform_indices = @transform_3, window_bounds = array<i64: 8, 128>}]} {
    %c0 = arith.constant 0 : index
    %c0_0 = arith.constant 0 : index
    %0 = vector.load %arg1[%c0, %c0_0] : memref<8x128xf32, #tpu.memory_space<vmem>>, vector<8x128xf32>
    %cst = arith.constant dense<0.000000e+00> : vector<8xf32>
    %1 = vector.multi_reduction <add>, %0, %cst [1] : vector<8x128xf32> to vector<8xf32>
    %2 = vector.shape_cast %1 : vector<8xf32> to vector<8x1xf32>
    %3 = arith.mulf %0, %0 : vector<8x128xf32>
    %cst_1 = arith.constant dense<0.000000e+00> : vector<8xf32>
    %4 = vector.multi_reduction <add>, %3, %cst_1 [1] : vector<8x128xf32> to vector<8xf32>
    %5 = vector.shape_cast %4 : vector<8xf32> to vector<8x1xf32>
    %cst_2 = arith.constant 3.125000e-02 : f32
    %6 = vector.broadcast %cst_2 : f32 to vector<8x1xf32>
    %7 = arith.mulf %2, %6 : vector<8x1xf32>
    %cst_3 = arith.constant 3.125000e-02 : f32
    %8 = vector.broadcast %cst_3 : f32 to vector<8x1xf32>
    %9 = arith.mulf %5, %8 : vector<8x1xf32>
    %10 = arith.mulf %7, %7 : vector<8x1xf32>
    %11 = arith.subf %9, %10 : vector<8x1xf32>
    %cst_4 = arith.constant 0.000000e+00 : f32
    %12 = vector.broadcast %cst_4 : f32 to vector<8x1xf32>
    %13 = arith.maximumf %11, %12 : vector<8x1xf32>
    %cst_5 = arith.constant 9.99999974E-6 : f32
    %14 = vector.broadcast %cst_5 : f32 to vector<8x1xf32>
    %15 = arith.addf %13, %14 : vector<8x1xf32>
    %16 = math.rsqrt %15 : vector<8x1xf32>
    %17 = vector.broadcast %7 : vector<8x1xf32> to vector<8x128xf32>
    %18 = arith.subf %0, %17 : vector<8x128xf32>
    %19 = vector.broadcast %16 : vector<8x1xf32> to vector<8x128xf32>
    %20 = arith.mulf %18, %19 : vector<8x128xf32>
    %c0_6 = arith.constant 0 : index
    %c0_7 = arith.constant 0 : index
    %21 = vector.load %arg2[%c0_6, %c0_7] : memref<1x128xf32, #tpu.memory_space<vmem>>, vector<1x128xf32>
    %22 = vector.broadcast %21 : vector<1x128xf32> to vector<8x128xf32>
    %23 = arith.mulf %20, %22 : vector<8x128xf32>
    %c0_8 = arith.constant 0 : index
    %c0_9 = arith.constant 0 : index
    %24 = vector.load %arg3[%c0_8, %c0_9] : memref<1x128xf32, #tpu.memory_space<vmem>>, vector<1x128xf32>
    %25 = vector.broadcast %24 : vector<1x128xf32> to vector<8x128xf32>
    %26 = arith.addf %23, %25 : vector<8x128xf32>
    %c0_10 = arith.constant 0 : index
    %c0_11 = arith.constant 0 : index
    %27 = vector.load %arg4[%c0_10, %c0_11] : memref<8x128xf32, #tpu.memory_space<vmem>>, vector<8x128xf32>
    tpu.vector_store %arg4[%c0_10, %c0_11], %26 {strides = array<i32>} : memref<8x128xf32, #tpu.memory_space<vmem>>, vector<8x128xf32>,
    return
  }
  func.func @transform_0(%arg0: i32) -> (i32, i32) {
    %c0_i32 = arith.constant 0 : i32
    %c0_i32_0 = arith.constant 0 : i32
    return %arg0, %c0_i32 : i32, i32
  }
  func.func @transform_1(%arg0: i32) -> (i32, i32) {
    %c0_i32 = arith.constant 0 : i32
    %c0_i32_0 = arith.constant 0 : i32
    %c0_i32_1 = arith.constant 0 : i32
    return %c0_i32, %c0_i32_0 : i32, i32
  }
  func.func @transform_2(%arg0: i32) -> (i32, i32) {
    %c0_i32 = arith.constant 0 : i32
    %c0_i32_0 = arith.constant 0 : i32
    %c0_i32_1 = arith.constant 0 : i32
    return %c0_i32, %c0_i32_0 : i32, i32
  }
  func.func @transform_3(%arg0: i32) -> (i32, i32) {
    %c0_i32 = arith.constant 0 : i32
    %c0_i32_0 = arith.constant 0 : i32
    return %arg0, %c0_i32 : i32, i32
  }
}

</mosaic_0001>

<bundles_post_ra>
// kernel: tpu_custom_call.1
= control target key start
LH: loop header
LB: loop body
LE: loop exit
PB: predicated region body
PF: predicated region fallthrough
CT: control target
= control target key end

     0   :  { %8 = vsyncpa [#allocation3], 0  ;;  %s627_s0 = inlined_call_operand.hbm [shape: f32[16,128], index: 0, kind: input, shape index: {}]   ;;  %s628_s1 = inlined_call_operand.vmem [shape: f32[1,128], index: 1, kind: input, shape index: {}]   ;;  %s629_s2 = inlined_call_operand.vmem [shape: f32[1,128], index: 2, kind: input, shape index: {}]   ;;  %s630_s3 = inlined_call_operand.hbm [shape: f32[16,128], index: 3, kind: output, shape index: {}]  }
   0x1   :  { %10 = vsyncpa [#allocation3 + $0x1], 0 }
   0x2   :  { %11 = vsyncpa [#allocation4], 0 }
   0x3   :  { %13 = vsyncpa [#allocation4 + $0x1], 0  ;;  %s480_s12 = smov 0   ;;  %s482_s13 = smov 0  }
   0x4   :  { %s484_s14 = smov 0   ;;  %s486_s15 = smov 0  }
   0x5 LB: > { %s501_s16 = sadd.s32 4294967295, %s456_s15   ;;  %s302_s17 = sadd.s32 4294967294, %s456_s15   ;;  %s456_s15 = sphi %s486_s15, %s647_s15   ;;  %s452_s14 = sphi %s484_s14, %s646_s14   ;;  %s448_s13 = sphi %s482_s13, %s645_s13   ;;  %s444_s12 = sphi %s480_s12, %s644_s12  }
   0x6   : > { %s505_s18 = sadd.s32 1, %s456_s15   ;;  %s26_s19 = sadd.s32 1, %s452_s14 }
   0x7   : > { %s23_s20 = ssub.s32 %s456_s15, %s505_s18  ;;  %p33_p0 = scmp.ne.s32.totalorder %s452_s14, %s448_s13 }
   0x8   : > { %p24_p1 = scmp.eq.s32.totalorder %s23_s20, 0  ;;  %p34_p2 = scmp.eq.s32.totalorder %s456_s15, 0 }
   0x9   : > { %p39_p3 = scmp.ne.s32.totalorder %s448_s13, %s444_s12  ;;  %p40_p4 = scmp.eq.s32.totalorder %s501_s16, 0 }
   0xa   : > { %s517_s21 = scalar_select %p24_p1, %s452_s14, %s26_s19  }
   0xb   : > { %p519_p5 = por %p34_p2, %p33_p0  ;;  %p523_p6 = por %p40_p4, %p39_p3 }
   0xc   : > { %p105_p7 = scmp.eq.s32.totalorder %s501_s16, 1  ;;  %p111_p8 = scmp.eq.s32.totalorder %s302_s17, 1 }
   0xd   : > { %s634_s23 = scalar_select %p523_p6, 1, 0 }
   0xe   : > { %p328_p10 = scmp.lt.s32.totalorder %s456_s15, 2  ;;  %p530_p11 = por %p105_p7, %p33_p0 }
   0xf   : > { %p534_p12 = por %p111_p8, %p39_p3  ;;  %s137_s26 = sand.u32 1, %s452_s14  }
  0x10   : > { %s635_s24 = scalar_select %p530_p11, 1, 0 }
  0x11   : > { %s636_s25 = scalar_select %p534_p12, 1, 0 }
  0x12   : > { %s306_s27 = sshll.u32 %s456_s15, 7  ;;  %s305_s28 = sshll.u32 %s137_s26, 3 }
  0x13   : > { %s543_s4 = scalar_lea.hbm %s627_s0, %s306_s27  ;;  %s141_s5 = scalar_lea.vmem [#allocation2], %s305_s28 }
  0x14   : > { %s148_s6 = sshll.u32 %s141_s5, 4  ;;  %p547_p13 = pnand %p328_p10, %p519_p5  ;;  %s551_s6 = int_to_ptr.vmem [resolvable:$true] %s148_s6 }
  0x15   : > { %s138_s8 = scalar_lea.sflag [#allocation3], %s137_s26  ;;  %s364_s9 = scalar_lea.hbm %s543_s4, 128 }
  0x16   : > { %p365_p2 = scmp.ne.s32.totalorder %s543_s4, %s364_s9  ;;  %p366_p3 = pneg %p547_p13 }
  0x17   : > { %s369_s17 = scalar_lea.hbm %s627_s0, 256  ;;  %p370_p5 = scmp.lt.s32.totalorder %s543_s4, %s627_s0 }
  0x18   : > { %p367_p4 = pnand %p366_p3, %p365_p2  ;;  %p371_p8 = scmp.lt.s32.totalorder %s369_s17, %s364_s9 }
  0x1a   : > { %p368_p7 = pneg %p367_p4  ;;  %p372_p10 = por %p371_p8, %p370_p5 }
  0x1c   : > { %p373_p9 = pnand %p372_p10, %p368_p7 }
  0x1e   : > { %376 = shalt.err (!%p373_p9)
}
  0x1f   : > { %s377_s22 = scalar_lea.vmem %s551_s6, 128  ;;  %s458_s26 = smov [#allocation2]  }
  0x20   : > { %p378_p0 = scmp.ne.s32.totalorder %s551_s6, %s377_s22  ;;  %s382_s27 = sshll.u32 %s458_s26, 4  ;;  %s383_s27 = int_to_ptr.vmem [resolvable:$false] %s382_s27 }
  0x21   : > { %s384_s28 = scalar_lea.vmem %s383_s27, 256  ;;  %p385_p4 = scmp.lt.s32.totalorder %s551_s6, %s383_s27 }
  0x22   : > { %p380_p1 = pnand %p378_p0, %p366_p3  ;;  %p386_p12 = scmp.lt.s32.totalorder %s384_s28, %s377_s22 }
  0x24   : > { %p381_p2 = pneg %p380_p1  ;;  %p387_p11 = por %p386_p12, %p385_p4 }
  0x26   : > { %p388_p6 = pnand %p387_p11, %p381_p2 }
  0x28   : > { %391 = shalt.err (!%p388_p6)
}
  0x29   : > { %323 = dma.hbm_to_vmem [thread:$0]  (!%p547_p13), %s543_s4, 128, %s551_s6, %s138_s8  }
  0x2a   : > { %p638_p9 = scmp.lt.s32.totalorder %s456_s15, 3  ;;  %p639_p7 = scmp.ge.s32.totalorder %s456_s15, 1 }
  0x2c   : > { %p154_p0 = pnand %p639_p7, %p638_p9 }
  0x2d   : > { %s578_s29 = sand.u32 (!%p154_p0), 1, %s448_s13   ;;  %p640_p6 = scmp.ne.s32.totalorder (!%p154_p0), %s634_s23, 0 }
  0x2e   : > { %157 = sbr.rel (%p154_p0) target bundleno = 236 (0xec), region = 32  ;;  %s308_s30 = sshll.u32 (!%p154_p0), %s578_s29, 3 }
  0x2f   : > { %s160_s5 = scalar_lea.sflag (!%p154_p0), [#allocation3], %s578_s29  ;;  %s163_s9 = scalar_lea.vmem (!%p154_p0), [#allocation2], %s308_s30 }
  0x33   : > { %435 = dma.done.wait (%p640_p6), %s160_s5, 128  }
  0x34   : > { %437 = vsyncadd (%p640_p6), %s160_s5, 4294967168  ;;  %v186_v0 = vld [vmem:[%s163_s9] sm:$0xff]  ;;  %s313_s8 = sshll.u32 %s501_s16, 7  ;;  %s185_s10 = scalar_lea.vmem [#allocation5], %s308_s30 }
  0x35   : > { %187 = vadd.xlane.f32.xlu0 %v186_v0  ;;  %v189_v1 = vmul.f32 %v186_v0, %v186_v0  ;;  %v310_v12 = vld [vmem:[%s628_s1] ss:$0 sm:$0xff]  ;;  %s232_s11 = sshll.u32 %s185_s10, 4  ;;  %s230_s20 = scalar_lea.hbm %s630_s3, %s313_s8  ;;  %s233_s11 = int_to_ptr.vmem [resolvable:$true] %s232_s11 }
  0x36   : > { %v311_v14 = vld [vmem:[%s629_s2] ss:$0 sm:$0xff]  ;;  %s219_s22 = scalar_lea.sflag [#allocation4], %s578_s29  ;;  %s392_s26 = scalar_lea.vmem %s233_s11, 128 }
  0x37   : > { %p393_p11 = scmp.ne.s32.totalorder %s233_s11, %s392_s26  ;;  %p641_p12 = scmp.ne.s32.totalorder %s635_s24, 0 }
  0x38   : > { %s459_s27 = smov [#allocation5]  }
  0x39   : > { %190 = vadd.xlane.f32.xlu0 %v189_v1  ;;  %p394_p13 = pnand %p393_p11, %p641_p12  ;;  %s396_s28 = sshll.u32 %s459_s27, 4  ;;  %s397_s28 = int_to_ptr.vmem [resolvable:$false] %s396_s28 }
  0x3a   : > { %s398_s16 = scalar_lea.vmem %s397_s28, 256  ;;  %p399_p3 = scmp.lt.s32.totalorder %s233_s11, %s397_s28 }
  0x3b   : > { %p395_p1 = pneg %p394_p13  ;;  %p400_p5 = scmp.lt.s32.totalorder %s398_s16, %s392_s26 }
  0x3d   : > { %p401_p8 = por %p400_p5, %p399_p3 }
  0x3f   : > { %p402_p10 = pnand %p401_p8, %p395_p1 }
  0xbe   : > { %v188_v2 = vpop.xlane.xlu0 %187 }
  0xbf   : > { %v192_v3 = vmul.f32 0.03125, %v188_v2 }
  0xc1   : > { %v194_v5 = vmul.f32 %v192_v3, %v192_v3  ;;  %v199_v10 = vsub.f32 %v186_v0, %v192_v3 }
  0xc2   : > { %v191_v4 = vpop.xlane.xlu0 %190 }
  0xc3   : > { %v193_v6 = vmul.f32 0.03125, %v191_v4 }
  0xc5   : > { %v195_v7 = vsub.f32 %v193_v6, %v194_v5 }
  0xc7   : > { %v196_v8 = vmax.f32 %v195_v7, 0.0 }
  0xc9   : > { %v197_v9 = vadd.f32 1e-05, %v196_v8 }
  0xcb   : > { %362 = vrsqrt.f32 %v197_v9 }
  0xd8   : > { %v363_v11 = vpop.eup %362 }
  0xd9   : > { %v200_v13 = vmul.f32 %v363_v11, %v199_v10 }
  0xdb   : > { %v208_v15 = vmul.f32 %v310_v12, %v200_v13 }
  0xdd   : > { %v216_v16 = vadd.f32 %v311_v14, %v208_v15 }
  0xdf   : > { %217 = vst [vmem:[%s185_s10] sm:$0xff] %v216_v16 }
  0xe0   : > { %405 = shalt.err (!%p402_p10)
}
  0xe1   : > { %s406_s30 = scalar_lea.hbm %s230_s20, 128  ;;  %s410_s9 = scalar_lea.hbm %s630_s3, 256 }
  0xe2   : > { %p407_p2 = scmp.ne.s32.totalorder %s230_s20, %s406_s30  ;;  %p411_p7 = scmp.lt.s32.totalorder %s230_s20, %s630_s3 }
  0xe3   : > { %p412_p0 = scmp.lt.s32.totalorder %s410_s9, %s406_s30 }
  0xe4   : > { %p408_p4 = pnand %p407_p2, %p641_p12 }
  0xe5   : > { %p413_p6 = por %p412_p0, %p411_p7 }
  0xe6   : > { %p409_p9 = pneg %p408_p4 }
  0xe8   : > { %p414_p11 = pnand %p413_p6, %p409_p9 }
  0xea   : > { %417 = shalt.err (!%p414_p11)
}
  0xeb   : > { %318 = dma.vmem_to_hbm [thread:$0]  (%p641_p12), %s233_s11, 128, %s230_s20, %s219_s22  }
  0xec PF: > { %s244_s6 = sand.u32 1, %s444_s12   ;;  %p642_p13 = scmp.ne.s32.totalorder %s636_s25, 0 }
  0xed   : > { %p643_p1 = scmp.ge.s32.totalorder %s456_s15, 2  ;;  %s245_s7 = scalar_lea.sflag [#allocation4], %s244_s6 }
  0xef   : > { %p325_p3 = pnand %p643_p1, %p642_p13 }
  0xf1   : > { %p326_p5 = pneg %p325_p3 }
  0xf3   : > { %439 = dma.done.wait (%p326_p5), %s245_s7, 128  }
  0xf4   : > { %441 = vsyncadd (%p326_p5), %s245_s7, 4294967168  ;;  %p16_p8 = scmp.ge.s32.totalorder %s505_s18, 4   ;;  %s644_s12 = smov %s448_s13 }
  0xf5   : > { %s645_s13 = smov %s452_s14  ;;  %s646_s14 = smov %s517_s21 }
  0xf6   : > { %s647_s15 = smov %s505_s18  ;;  %18 = sbr.rel (!%p16_p8) target bundleno = 5 (0x5), region = 77 }
  0xfb   :  { %250 = vsyncpa [#allocation3], 1 }
  0xfc   :  { %252 = vsyncpa [#allocation3 + $0x1], 1 }
  0xfd   :  { %253 = vsyncpa [#allocation4], 1 }
  0xfe   :  { %255 = vsyncpa [#allocation4 + $0x1], 1 }

</bundles_post_ra>
